<compile_context>
chip_gen: v6e
topology: v6e:2x2x1
jax: 0.10.0
libtpu: 0.0.40
codegen_flags: <defaults>
</compile_context>

<pallas_src>
import functools
from typing import NamedTuple

import jax
import jax.numpy as jnp
from jax import lax
from jax.experimental import pallas as pl
from jax.experimental.pallas import tpu as pltpu


_NEG = -1e30  # additive-mask value for padded classes / rows


def _round_up(x, m):
    return (x + m - 1) // m * m


def _log_softmax(x):
    m = jnp.max(x, axis=-1, keepdims=True)
    s = x - m
    return s - jnp.log(jnp.sum(jnp.exp(s), axis=-1, keepdims=True))


def _pad2(a, rows, cols, dtype):
    r, c = a.shape
    return jnp.pad(a.astype(dtype), ((0, rows - r), (0, cols - c)))


def _vmem_budget_bytes():
    """Generation-aware VMEM budget: ~96 MiB on 128-MiB parts (v5e/v6e),
    ~48 MiB on 64-MiB parts (v7x); leaves headroom for compiler scratch."""
    try:
        cap = pltpu.get_tpu_info().vmem_capacity_bytes
    except Exception:
        cap = 64 * 1024 * 1024
    return min(int(cap * 3 // 4), 96 * 1024 * 1024)


class TeacherParams(NamedTuple):
    """Pre-padded / pre-cast teacher linear classifier.  Prepare ONCE and
    reuse across steps so the large f32->bf16 cast + pad of the weight does
    not burn HBM bandwidth on every loss evaluation."""
    w: jax.Array      # (Dp, Cp) bf16, zero-padded
    b: jax.Array      # (1,  Cp) f32,  zero-padded
    d: int            # original input feature count D
    c: int            # original number of classes C
    tk: int           # K tile the padding was derived for (Dp % tk == 0)


def prepare_teacher(teacher_w, teacher_b, *, tk=1024):
    D, C = teacher_w.shape
    Cp = _round_up(C, 128)
    tk_eff = min(tk, _round_up(D, 128))
    Dp = _round_up(D, tk_eff)
    w_p = _pad2(teacher_w, Dp, Cp, jnp.bfloat16)
    b_p = _pad2(teacher_b.astype(jnp.float32).reshape(1, C), 1, Cp, jnp.float32)
    return TeacherParams(w=w_p, b=b_p, d=D, c=C, tk=tk_eff)


# ---------------------------------------------------------------------------
# Base-criterion-only kernel (distillation_type == 'none'):
# per-batch-tile, per-class partial CE numerators (lane-dense output rows).
# ---------------------------------------------------------------------------
def _base_ce_kernel(s_ref, lab_ref, base_ref, *, B, C):
    i = pl.program_id(0)
    tm, Cp = s_ref.shape
    classes = lax.broadcasted_iota(jnp.int32, (tm, Cp), 1)
    rows = i * tm + lax.broadcasted_iota(jnp.int32, (tm, Cp), 0)
    cmask = classes < C
    rmask = rows < B
    logp_s = _log_softmax(jnp.where(cmask, s_ref[...], _NEG))
    onehot = jnp.logical_and(classes == lab_ref[...], rmask)
    base_ref[0] = -jnp.sum(jnp.where(onehot, logp_s, 0.0),
                           axis=0, keepdims=True)


# ---------------------------------------------------------------------------
# Fused kernel: K-tiled teacher matmul (in-kernel f32->bf16 cast, f32 VMEM
# accumulation) + base CE + soft-KL / hard-CE distillation partial sums.
# Teacher-independent work runs on k == 0 (hidden under the K loop).
# ---------------------------------------------------------------------------
def _fused_kernel(x_ref, w_ref, b_ref, s_ref, kd_ref, lab_ref,
                  base_ref, dist_ref, t_acc, lk_scr,
                  *, B, C, D, tau, distillation_type):
    i = pl.program_id(0)          # batch tile ("parallel")
    k = pl.program_id(1)          # teacher reduction tile ("arbitrary")
    nk = pl.num_programs(1)
    tm, tk = x_ref.shape
    Cp = w_ref.shape[1]
    inv_tau = jnp.float32(1.0 / tau)

    # Teacher matmul contribution. x is f32/unpadded in HBM; cast to bf16
    # per-tile here. Only the ragged last K tile needs column masking
    # (decided at trace time).
    xt = x_ref[...]
    if D % tk != 0:
        col = k * tk + lax.broadcasted_iota(jnp.int32, (tm, tk), 1)
        xt = jnp.where(col < D, xt, 0.0)
    contrib = jnp.dot(xt.astype(jnp.bfloat16), w_ref[...],
                      preferred_element_type=jnp.float32)

    @pl.when(k == 0)
    def _():
        # Store the first partial product directly: no zero-fill, no extra
        # accumulator read.
        t_acc[...] = contrib

        # Teacher-independent epilogue work, hidden under the K loop.
        classes = lax.broadcasted_iota(jnp.int32, (tm, Cp), 1)
        rows = i * tm + lax.broadcasted_iota(jnp.int32, (tm, Cp), 0)
        cmask = classes < C          # mask padded classes
        rmask = rows < B             # mask padded batch rows

        # ---- base criterion: CE on the class-token logits ----
        logp_s = _log_softmax(jnp.where(cmask, s_ref[...], _NEG))
        onehot = jnp.logical_and(classes == lab_ref[...], rmask)
        base_ref[0] = -jnp.sum(jnp.where(onehot, logp_s, 0.0),
                               axis=0, keepdims=True)

        # ---- student dist-token log-softmax, stashed for the last K step ----
        if distillation_type == 'soft':
            lk_scr[...] = _log_softmax(
                jnp.where(cmask, kd_ref[...] * inv_tau, _NEG))
        else:  # 'hard'
            lk_scr[...] = _log_softmax(jnp.where(cmask, kd_ref[...], _NEG))

    @pl.when(k != 0)
    def _():
        t_acc[...] += contrib

    @pl.when(k == nk - 1)
    def _():
        classes = lax.broadcasted_iota(jnp.int32, (tm, Cp), 1)
        rows = i * tm + lax.broadcasted_iota(jnp.int32, (tm, Cp), 0)
        cmask = classes < C
        rmask = rows < B
        vmask = jnp.logical_and(cmask, rmask)

        t = t_acc[...] + b_ref[...]          # bias added once, on last K step
        if distillation_type == 'soft':
            ts = jnp.where(cmask, t * inv_tau, _NEG)
            m_t = jnp.max(ts, axis=-1, keepdims=True)
            e_t = jnp.exp(ts - m_t)
            denom = jnp.sum(e_t, axis=-1, keepdims=True)
            # p_t * (log p_t - log p_s) fused into one expression; exact
            # (tm,1) reciprocal so p_t and log p_t share one normalisation.
            kl = (e_t * pl.reciprocal(denom)) * \
                 ((ts - m_t) - jnp.log(denom) - lk_scr[...])
            dist_ref[0] = jnp.sum(jnp.where(vmask, kl, 0.0),
                                  axis=0, keepdims=True)
        else:  # 'hard'
            tmask = jnp.where(vmask, t, _NEG)
            mx = jnp.max(tmask, axis=-1, keepdims=True)
            idx = jnp.min(jnp.where(tmask == mx, classes, Cp),
                          axis=-1, keepdims=True)    # argmax, first-index ties
            onehot_t = jnp.logical_and(classes == idx, rmask)
            dist_ref[0] = -jnp.sum(jnp.where(onehot_t, lk_scr[...], 0.0),
                                   axis=0, keepdims=True)


# ---------------------------------------------------------------------------
# Wrapper: padding of the (small) student tensors, tiling, pallas_call,
# tiny final reduction / alpha blend.
# ---------------------------------------------------------------------------
def distillation_loss(inputs, outputs, labels, teacher=None, *,
                      distillation_type='soft', alpha=0.5, tau=3.0,
                      tm=256, tk=1024):
    assert distillation_type in ('none', 'soft', 'hard')
    if isinstance(outputs, (tuple, list)):
        outputs, outputs_kd = outputs
    else:
        outputs_kd = None

    B, C = outputs.shape
    Cp = _round_up(C, 128)                       # lane-dense class dim
    tm = _round_up(min(tm, _round_up(B, 16)), 16)  # batch tile, 16-multiple
    n_m = (B + tm - 1) // tm
    Bp = n_m * tm

    s_p = _pad2(outputs, Bp, Cp, jnp.float32)
    lab_p = jnp.pad(labels.astype(jnp.int32).reshape(B, 1),
                    ((0, Bp - B), (0, 0)))
    # TODO(synk): labels could ride via SMEM scalar prefetch instead of a
    # lane-padded (tm, 1) VMEM block; traffic is negligible so kept simple.

    if distillation_type == 'none':
        base_part = pl.pallas_call(
            functools.partial(_base_ce_kernel, B=B, C=C),
            out_shape=jax.ShapeDtypeStruct((n_m, 1, Cp), jnp.float32),
            grid_spec=pltpu.PrefetchScalarGridSpec(
                num_scalar_prefetch=0, grid=(n_m,),
                in_specs=[pl.BlockSpec((tm, Cp), lambda i: (i, 0)),
                          pl.BlockSpec((tm, 1), lambda i: (i, 0))],
                out_specs=pl.BlockSpec((1, 1, Cp), lambda i: (i, 0, 0))),
            compiler_params=pltpu.CompilerParams(
                dimension_semantics=("parallel",)),
        )(s_p, lab_p)
        return jnp.sum(base_part) / B

    if outputs_kd is None:
        raise ValueError(
            'When knowledge distillation is enabled, the model is expected to '
            'return a Tuple[Tensor, Tensor] with the output of the class_token '
            'and the dist_token')
    if teacher is None:
        raise ValueError('teacher parameters are required for distillation')
    if not isinstance(teacher, TeacherParams):
        # Backwards-compatible path: raw (w, b). Prefer prepare_teacher() once
        # outside the step so the weight pad/bf16 cast is hoisted.
        w_raw, b_raw = teacher
        teacher = prepare_teacher(w_raw, b_raw, tk=tk)

    D, Ct = teacher.d, teacher.c
    assert Ct == C, 'teacher classes must match student classes'
    Dp, Cp_w = teacher.w.shape
    assert Cp_w == Cp
    tk = teacher.tk
    n_k = Dp // tk

    # x stays f32 and unpadded in HBM; ragged edges are masked in-kernel.
    x2d = inputs.reshape(B, -1).astype(jnp.float32)
    assert x2d.shape[1] == D

    kd_p = _pad2(outputs_kd, Bp, Cp, jnp.float32)

    # ---- generation-aware VMEM budgeting (v7x has only 64 MiB / core) ----
    budget = _vmem_budget_bytes()

    def footprint(tm_, tk_):
        return (2 * tm_ * tk_ * 4            # x blocks (f32, double-buffered)
                + 2 * tk_ * Cp * 2           # W blocks (bf16)
                + 2 * 2 * tm_ * Cp * 4       # cls + kd logits blocks
                + 2 * tm_ * 128 * 4          # labels block (lane padded)
                + 2 * tm_ * Cp * 4           # t_acc + lk scratch
                + 4 * 2 * Cp * 4)            # partial-sum outputs

    while (footprint(tm, tk) > budget and tk >= 512
           and Dp % (tk // 2) == 0):
        tk //= 2
    while (footprint(tm, tk) > budget and tm >= 32
           and (tm // 2) % 16 == 0):
        tm //= 2
    n_k = Dp // tk
    n_m = Bp // tm

    kernel = functools.partial(_fused_kernel, B=B, C=C, D=D, tau=float(tau),
                               distillation_type=distillation_type)
    cost = pl.CostEstimate(
        flops=2 * Bp * Dp * Cp,
        transcendentals=4 * Bp * Cp,
        bytes_accessed=int(x2d.size * 4                 # x read once (f32)
                           + n_m * teacher.w.size * 2   # W streamed per i tile
                           + (s_p.size + kd_p.size) * 4
                           + teacher.b.size * 4
                           + lab_p.size * 4
                           + 2 * n_m * Cp * 4))

    base_part, dist_part = pl.pallas_call(
        kernel,
        out_shape=(jax.ShapeDtypeStruct((n_m, 1, Cp), jnp.float32),
                   jax.ShapeDtypeStruct((n_m, 1, Cp), jnp.float32)),
        grid_spec=pltpu.PrefetchScalarGridSpec(
            num_scalar_prefetch=0,
            grid=(n_m, n_k),
            in_specs=[pl.BlockSpec((tm, tk), lambda i, k: (i, k)),   # x (f32)
                      pl.BlockSpec((tk, Cp), lambda i, k: (k, 0)),   # W (bf16)
                      pl.BlockSpec((1, Cp), lambda i, k: (0, 0)),    # bias
                      pl.BlockSpec((tm, Cp), lambda i, k: (i, 0)),   # cls logits
                      pl.BlockSpec((tm, Cp), lambda i, k: (i, 0)),   # kd  logits
                      pl.BlockSpec((tm, 1), lambda i, k: (i, 0))],   # labels
            out_specs=[pl.BlockSpec((1, 1, Cp), lambda i, k: (i, 0, 0)),
                       pl.BlockSpec((1, 1, Cp), lambda i, k: (i, 0, 0))],
            scratch_shapes=[pltpu.VMEM((tm, Cp), jnp.float32),    # t_acc
                            pltpu.VMEM((tm, Cp), jnp.float32)]),  # lk / logp_kd
        compiler_params=pltpu.CompilerParams(
            dimension_semantics=("parallel", "arbitrary"),
            vmem_limit_bytes=budget),
        cost_estimate=cost,
    )(x2d, teacher.w, teacher.b, s_p, kd_p, lab_p)
    # TODO(synk): when n_m == 1 on v7x (2 TensorCores) the parallel batch axis
    # leaves one core idle; a K-split with a tiny cross-core reduction would
    # only pay off if the kernel were MXU-bound (it is HBM-bound here).

    base_loss = jnp.sum(base_part) / B
    dist_sum = jnp.sum(dist_part)
    if distillation_type == 'soft':
        dist_loss = dist_sum * (tau * tau) / (B * C)
    else:
        dist_loss = dist_sum / B
    return base_loss * (1.0 - alpha) + dist_loss * alpha


# ---------------------------------------------------------------------------
# Pure-JAX reference (teacher matmul in the same bf16-in / f32-accum precision)
# ---------------------------------------------------------------------------
def _reference(inputs, outputs, outputs_kd, labels, w, b, dt, alpha, tau):
    B = outputs.shape[0]
    logp = jax.nn.log_softmax(outputs, axis=1)
    base = -jnp.mean(logp[jnp.arange(B), labels])
    if dt == 'none':
        return base
    t = jnp.dot(inputs.reshape(B, -1).astype(jnp.bfloat16),
                w.astype(jnp.bfloat16),
                preferred_element_type=jnp.float32) + b
    if dt == 'soft':
        lt = jax.nn.log_softmax(t / tau, axis=1)
        lk = jax.nn.log_softmax(outputs_kd / tau, axis=1)
        dist = jnp.sum(jnp.exp(lt) * (lt - lk)) * tau * tau / outputs_kd.size
    else:
        hard = jnp.argmax(t, axis=1)
        lpkd = jax.nn.log_softmax(outputs_kd, axis=1)
        dist = -jnp.mean(lpkd[jnp.arange(B), hard])
    return base * (1 - alpha) + dist * alpha


if __name__ == "__main__":
    alpha, tau = 0.5, 3.0

    def make_case(seed, B, Cch, H, W, num_classes):
        key = jax.random.PRNGKey(seed)
        kx, ks, kk, kl, kw, kb = jax.random.split(key, 6)
        D = Cch * H * W
        inputs = jax.random.normal(kx, (B, Cch, H, W), jnp.float32)   # NCHW
        cls = jax.random.normal(ks, (B, num_classes), jnp.float32)
        kd = jax.random.normal(kk, (B, num_classes), jnp.float32)
        labels = jax.random.randint(kl, (B,), 0, num_classes)
        w = jax.random.normal(kw, (D, num_classes), jnp.float32) * 0.02
        b = jax.random.normal(kb, (num_classes,), jnp.float32) * 0.02
        return inputs, cls, kd, labels, w, b

    # Case 1: aligned D (= 4*16*16 = 1024), tiny batch.
    inputs, cls, kd, labels, tw, tb = make_case(0, 2, 4, 16, 16, 16)
    teacher = prepare_teacher(tw, tb)   # pad + bf16-cast hoisted, done once

    results = []
    for dt in ('soft', 'hard', 'none'):
        loss = distillation_loss(inputs, (cls, kd), labels, teacher,
                                 distillation_type=dt, alpha=alpha, tau=tau)
        ref = _reference(inputs, cls, kd, labels, tw, tb, dt, alpha, tau)
        results.append((dt, loss, ref))

    # Case 2: ragged D (3*12*12 = 432, not a multiple of the K tile) and
    # ragged batch rows — exercises the in-kernel masking paths.
    inputs2, cls2, kd2, labels2, tw2, tb2 = make_case(1, 5, 3, 12, 12, 10)
    teacher2 = prepare_teacher(tw2, tb2)
    for dt in ('soft', 'hard'):
        loss = distillation_loss(inputs2, (cls2, kd2), labels2, teacher2,
                                 distillation_type=dt, alpha=alpha, tau=tau)
        ref = _reference(inputs2, cls2, kd2, labels2, tw2, tb2, dt, alpha, tau)
        results.append((dt + '_ragged', loss, ref))

    jax.block_until_ready([r[1] for r in results])

    for name, loss, ref in results:
        assert jnp.allclose(loss, ref, atol=5e-3, rtol=5e-3), (name, loss, ref)

    print("KERNEL_OK")
</pallas_src>

<mosaic_0001>
module attributes {stable_mosaic.version = 11 : i64} {
  func.func @_fused_kernel(%arg0: i32, %arg1: i32, %arg2: memref<16x1024xf32, #tpu.memory_space<vmem>>, %arg3: memref<1024x128xbf16, #tpu.memory_space<vmem>>, %arg4: memref<1x128xf32, #tpu.memory_space<vmem>>, %arg5: memref<16x128xf32, #tpu.memory_space<vmem>>, %arg6: memref<16x128xf32, #tpu.memory_space<vmem>>, %arg7: memref<16x1xi32, #tpu.memory_space<vmem>>, %arg8: memref<1x1x128xf32, #tpu.memory_space<vmem>>, %arg9: memref<1x1x128xf32, #tpu.memory_space<vmem>>, %arg10: memref<16x128xf32, #tpu.memory_space<vmem>>, %arg11: memref<16x128xf32, #tpu.memory_space<vmem>>) attributes {dimension_semantics = [#tpu.dimension_semantics<parallel>, #tpu.dimension_semantics<arbitrary>], iteration_bounds = array<i64: 1, 1>, scalar_prefetch = 0 : i64, scratch_operands = 2 : i64, tpu.core_type = #tpu.core_type<tc>, window_params = [{transform_indices = @transform_0, window_bounds = array<i64: 16, 1024>}, {transform_indices = @transform_1, window_bounds = array<i64: 1024, 128>}, {pipeline_mode = #tpu.pipeline_mode<synchronous>, transform_indices = @transform_2, window_bounds = array<i64: 1, 128>}, {transform_indices = @transform_3, window_bounds = array<i64: 16, 128>}, {transform_indices = @transform_4, window_bounds = array<i64: 16, 128>}, {transform_indices = @transform_5, window_bounds = array<i64: 16, 1>}, {transform_indices = @transform_6, window_bounds = array<i64: 1, 1, 128>}, {transform_indices = @transform_7, window_bounds = array<i64: 1, 1, 128>}]} {
    %c0 = arith.constant 0 : index
    %c0_0 = arith.constant 0 : index
    %0 = vector.load %arg2[%c0, %c0_0] : memref<16x1024xf32, #tpu.memory_space<vmem>>, vector<16x1024xf32>
    %1 = arith.truncf %0 : vector<16x1024xf32> to vector<16x1024xbf16>
    %c0_1 = arith.constant 0 : index
    %c0_2 = arith.constant 0 : index
    %2 = vector.load %arg3[%c0_1, %c0_2] : memref<1024x128xbf16, #tpu.memory_space<vmem>>, vector<1024x128xbf16>
    %cst = arith.constant dense<0.000000e+00> : vector<16x128xf32>
    %3 = tpu.matmul %1, %2, %cst {dimension_numbers = #tpu.dot_dimension_numbers<[1], [0], [0], [1], [0, 0, 1, 1], [], []>} : vector<16x1024xbf16>, vector<1024x128xbf16>, vector<16x128xf32> -> vector<16x128xf32>
    %c0_i32 = arith.constant 0 : i32
    %4 = arith.cmpi eq, %arg1, %c0_i32 : i32
    %5 = arith.extui %4 : i1 to i32
    %cst_3 = arith.constant 0.333333343 : f32
    %c0_i32_4 = arith.constant 0 : i32
    %6 = arith.cmpi ne, %5, %c0_i32_4 : i32
    scf.if %6 {
      %c0_10 = arith.constant 0 : index
      %c0_11 = arith.constant 0 : index
      %13 = vector.load %arg10[%c0_10, %c0_11] : memref<16x128xf32, #tpu.memory_space<vmem>>, vector<16x128xf32>
      tpu.vector_store %arg10[%c0_10, %c0_11], %3 {strides = array<i32>} : memref<16x128xf32, #tpu.memory_space<vmem>>, vector<16x128xf32>,
      %14 = tpu.iota {dimensions = array<i32: 1>} : vector<16x128xi32>
      %c16_i32 = arith.constant 16 : i32
      %15 = arith.muli %arg0, %c16_i32 : i32
      %16 = tpu.iota {dimensions = array<i32: 0>} : vector<16x128xi32>
      %17 = vector.broadcast %15 : i32 to vector<16x128xi32>
      %18 = arith.addi %17, %16 : vector<16x128xi32>
      %c16_i32_12 = arith.constant 16 : i32
      %19 = vector.broadcast %c16_i32_12 : i32 to vector<16x128xi32>
      %20 = arith.cmpi slt, %14, %19 : vector<16x128xi32>
      %c2_i32 = arith.constant 2 : i32
      %21 = vector.broadcast %c2_i32 : i32 to vector<16x128xi32>
      %22 = arith.cmpi slt, %18, %21 : vector<16x128xi32>
      %c0_13 = arith.constant 0 : index
      %c0_14 = arith.constant 0 : index
      %23 = vector.load %arg5[%c0_13, %c0_14] : memref<16x128xf32, #tpu.memory_space<vmem>>, vector<16x128xf32>
      %cst_15 = arith.constant -1.000000e+30 : f32
      %24 = vector.broadcast %cst_15 : f32 to vector<16x128xf32>
      %25 = arith.select %20, %23, %24 : vector<16x128xi1>, vector<16x128xf32>
      %cst_16 = arith.constant dense<0xFF800000> : vector<16xf32>
      %26 = vector.multi_reduction <maximumf>, %25, %cst_16 [1] : vector<16x128xf32> to vector<16xf32>
      %27 = vector.shape_cast %26 : vector<16xf32> to vector<16x1xf32>
      %28 = vector.broadcast %27 : vector<16x1xf32> to vector<16x128xf32>
      %29 = arith.subf %25, %28 : vector<16x128xf32>
      %30 = math.exp %29 : vector<16x128xf32>
      %cst_17 = arith.constant dense<0.000000e+00> : vector<16xf32>
      %31 = vector.multi_reduction <add>, %30, %cst_17 [1] : vector<16x128xf32> to vector<16xf32>
      %32 = vector.shape_cast %31 : vector<16xf32> to vector<16x1xf32>
      %33 = math.log %32 : vector<16x1xf32>
      %34 = vector.broadcast %33 : vector<16x1xf32> to vector<16x128xf32>
      %35 = arith.subf %29, %34 : vector<16x128xf32>
      %c0_18 = arith.constant 0 : index
      %c0_19 = arith.constant 0 : index
      %36 = vector.load %arg7[%c0_18, %c0_19] : memref<16x1xi32, #tpu.memory_space<vmem>>, vector<16x1xi32>
      %37 = vector.broadcast %36 : vector<16x1xi32> to vector<16x128xi32>
      %38 = arith.cmpi eq, %14, %37 : vector<16x128xi32>
      %39 = arith.andi %38, %22 : vector<16x128xi1>
      %cst_20 = arith.constant 0.000000e+00 : f32
      %40 = vector.broadcast %cst_20 : f32 to vector<16x128xf32>
      %41 = arith.select %39, %35, %40 : vector<16x128xi1>, vector<16x128xf32>
      %cst_21 = arith.constant dense<0.000000e+00> : vector<128xf32>
      %42 = vector.multi_reduction <add>, %41, %cst_21 [0] : vector<16x128xf32> to vector<128xf32>
      %43 = vector.shape_cast %42 : vector<128xf32> to vector<1x128xf32>
      %cst_22 = arith.constant 0.000000e+00 : f32
      %44 = vector.broadcast %cst_22 : f32 to vector<1x128xf32>
      %45 = arith.subf %44, %43 : vector<1x128xf32>
      %c0_23 = arith.constant 0 : index
      %c0_24 = arith.constant 0 : index
      %c0_25 = arith.constant 0 : index
      %46 = vector.load %arg8[%c0_23, %c0_24, %c0_25] : memref<1x1x128xf32, #tpu.memory_space<vmem>>, vector<1x1x128xf32>
      %47 = vector.shape_cast %46 : vector<1x1x128xf32> to vector<1x128xf32>
      %48 = vector.shape_cast %45 : vector<1x128xf32> to vector<1x1x128xf32>
      tpu.vector_store %arg8[%c0_23, %c0_24, %c0_25], %48 {strides = array<i32>} : memref<1x1x128xf32, #tpu.memory_space<vmem>>, vector<1x1x128xf32>,
      %c0_26 = arith.constant 0 : index
      %c0_27 = arith.constant 0 : index
      %49 = vector.load %arg6[%c0_26, %c0_27] : memref<16x128xf32, #tpu.memory_space<vmem>>, vector<16x128xf32>
      %50 = vector.broadcast %cst_3 : f32 to vector<16x128xf32>
      %51 = arith.mulf %49, %50 : vector<16x128xf32>
      %cst_28 = arith.constant -1.000000e+30 : f32
      %52 = vector.broadcast %cst_28 : f32 to vector<16x128xf32>
      %53 = arith.select %20, %51, %52 : vector<16x128xi1>, vector<16x128xf32>
      %cst_29 = arith.constant dense<0xFF800000> : vector<16xf32>
      %54 = vector.multi_reduction <maximumf>, %53, %cst_29 [1] : vector<16x128xf32> to vector<16xf32>
      %55 = vector.shape_cast %54 : vector<16xf32> to vector<16x1xf32>
      %56 = vector.broadcast %55 : vector<16x1xf32> to vector<16x128xf32>
      %57 = arith.subf %53, %56 : vector<16x128xf32>
      %58 = math.exp %57 : vector<16x128xf32>
      %cst_30 = arith.constant dense<0.000000e+00> : vector<16xf32>
      %59 = vector.multi_reduction <add>, %58, %cst_30 [1] : vector<16x128xf32> to vector<16xf32>
      %60 = vector.shape_cast %59 : vector<16xf32> to vector<16x1xf32>
      %61 = math.log %60 : vector<16x1xf32>
      %62 = vector.broadcast %61 : vector<16x1xf32> to vector<16x128xf32>
      %63 = arith.subf %57, %62 : vector<16x128xf32>
      %c0_31 = arith.constant 0 : index
      %c0_32 = arith.constant 0 : index
      %64 = vector.load %arg11[%c0_31, %c0_32] : memref<16x128xf32, #tpu.memory_space<vmem>>, vector<16x128xf32>
      tpu.vector_store %arg11[%c0_31, %c0_32], %63 {strides = array<i32>} : memref<16x128xf32, #tpu.memory_space<vmem>>, vector<16x128xf32>,
    } else {
    }
    %c0_i32_5 = arith.constant 0 : i32
    %7 = arith.cmpi ne, %arg1, %c0_i32_5 : i32
    %8 = arith.extui %7 : i1 to i32
    %c0_i32_6 = arith.constant 0 : i32
    %9 = arith.cmpi ne, %8, %c0_i32_6 : i32
    scf.if %9 {
      %c0_10 = arith.constant 0 : index
      %c0_11 = arith.constant 0 : index
      %13 = vector.load %arg10[%c0_10, %c0_11] : memref<16x128xf32, #tpu.memory_space<vmem>>, vector<16x128xf32>
      %14 = arith.addf %13, %3 : vector<16x128xf32>
      %c0_12 = arith.constant 0 : index
      %c0_13 = arith.constant 0 : index
      %15 = vector.load %arg10[%c0_12, %c0_13] : memref<16x128xf32, #tpu.memory_space<vmem>>, vector<16x128xf32>
      tpu.vector_store %arg10[%c0_12, %c0_13], %14 {strides = array<i32>} : memref<16x128xf32, #tpu.memory_space<vmem>>, vector<16x128xf32>,
    } else {
    }
    %c0_i32_7 = arith.constant 0 : i32
    %10 = arith.cmpi eq, %arg1, %c0_i32_7 : i32
    %11 = arith.extui %10 : i1 to i32
    %cst_8 = arith.constant 0.333333343 : f32
    %c0_i32_9 = arith.constant 0 : i32
    %12 = arith.cmpi ne, %11, %c0_i32_9 : i32
    scf.if %12 {
      %13 = tpu.iota {dimensions = array<i32: 1>} : vector<16x128xi32>
      %c16_i32 = arith.constant 16 : i32
      %14 = arith.muli %arg0, %c16_i32 : i32
      %15 = tpu.iota {dimensions = array<i32: 0>} : vector<16x128xi32>
      %16 = vector.broadcast %14 : i32 to vector<16x128xi32>
      %17 = arith.addi %16, %15 : vector<16x128xi32>
      %c16_i32_10 = arith.constant 16 : i32
      %18 = vector.broadcast %c16_i32_10 : i32 to vector<16x128xi32>
      %19 = arith.cmpi slt, %13, %18 : vector<16x128xi32>
      %c2_i32 = arith.constant 2 : i32
      %20 = vector.broadcast %c2_i32 : i32 to vector<16x128xi32>
      %21 = arith.cmpi slt, %17, %20 : vector<16x128xi32>
      %22 = arith.andi %19, %21 : vector<16x128xi1>
      %c0_11 = arith.constant 0 : index
      %c0_12 = arith.constant 0 : index
      %23 = vector.load %arg10[%c0_11, %c0_12] : memref<16x128xf32, #tpu.memory_space<vmem>>, vector<16x128xf32>
      %c0_13 = arith.constant 0 : index
      %c0_14 = arith.constant 0 : index
      %24 = vector.load %arg4[%c0_13, %c0_14] : memref<1x128xf32, #tpu.memory_space<vmem>>, vector<1x128xf32>
      %25 = vector.broadcast %24 : vector<1x128xf32> to vector<16x128xf32>
      %26 = arith.addf %23, %25 : vector<16x128xf32>
      %27 = vector.broadcast %cst_8 : f32 to vector<16x128xf32>
      %28 = arith.mulf %26, %27 : vector<16x128xf32>
      %cst_15 = arith.constant -1.000000e+30 : f32
      %29 = vector.broadcast %cst_15 : f32 to vector<16x128xf32>
      %30 = arith.select %19, %28, %29 : vector<16x128xi1>, vector<16x128xf32>
      %cst_16 = arith.constant dense<0xFF800000> : vector<16xf32>
      %31 = vector.multi_reduction <maximumf>, %30, %cst_16 [1] : vector<16x128xf32> to vector<16xf32>
      %32 = vector.shape_cast %31 : vector<16xf32> to vector<16x1xf32>
      %33 = vector.broadcast %32 : vector<16x1xf32> to vector<16x128xf32>
      %34 = arith.subf %30, %33 : vector<16x128xf32>
      %35 = math.exp %34 : vector<16x128xf32>
      %cst_17 = arith.constant dense<0.000000e+00> : vector<16xf32>
      %36 = vector.multi_reduction <add>, %35, %cst_17 [1] : vector<16x128xf32> to vector<16xf32>
      %37 = vector.shape_cast %36 : vector<16xf32> to vector<16x1xf32>
      %38 = tpu.reciprocal %37 : vector<16x1xf32> -> vector<16x1xf32>
      %39 = vector.broadcast %38 : vector<16x1xf32> to vector<16x128xf32>
      %40 = arith.mulf %35, %39 : vector<16x128xf32>
      %41 = vector.broadcast %32 : vector<16x1xf32> to vector<16x128xf32>
      %42 = arith.subf %30, %41 : vector<16x128xf32>
      %43 = math.log %37 : vector<16x1xf32>
      %44 = vector.broadcast %43 : vector<16x1xf32> to vector<16x128xf32>
      %45 = arith.subf %42, %44 : vector<16x128xf32>
      %c0_18 = arith.constant 0 : index
      %c0_19 = arith.constant 0 : index
      %46 = vector.load %arg11[%c0_18, %c0_19] : memref<16x128xf32, #tpu.memory_space<vmem>>, vector<16x128xf32>
      %47 = arith.subf %45, %46 : vector<16x128xf32>
      %48 = arith.mulf %40, %47 : vector<16x128xf32>
      %cst_20 = arith.constant 0.000000e+00 : f32
      %49 = vector.broadcast %cst_20 : f32 to vector<16x128xf32>
      %50 = arith.select %22, %48, %49 : vector<16x128xi1>, vector<16x128xf32>
      %cst_21 = arith.constant dense<0.000000e+00> : vector<128xf32>
      %51 = vector.multi_reduction <add>, %50, %cst_21 [0] : vector<16x128xf32> to vector<128xf32>
      %52 = vector.shape_cast %51 : vector<128xf32> to vector<1x128xf32>
      %c0_22 = arith.constant 0 : index
      %c0_23 = arith.constant 0 : index
      %c0_24 = arith.constant 0 : index
      %53 = vector.load %arg9[%c0_22, %c0_23, %c0_24] : memref<1x1x128xf32, #tpu.memory_space<vmem>>, vector<1x1x128xf32>
      %54 = vector.shape_cast %53 : vector<1x1x128xf32> to vector<1x128xf32>
      %55 = vector.shape_cast %52 : vector<1x128xf32> to vector<1x1x128xf32>
      tpu.vector_store %arg9[%c0_22, %c0_23, %c0_24], %55 {strides = array<i32>} : memref<1x1x128xf32, #tpu.memory_space<vmem>>, vector<1x1x128xf32>,
    } else {
    }
    return
  }
  func.func @transform_0(%arg0: i32, %arg1: i32) -> (i32, i32) {
    %c0_i32 = arith.constant 0 : i32
    return %arg0, %arg1 : i32, i32
  }
  func.func @transform_1(%arg0: i32, %arg1: i32) -> (i32, i32) {
    %c0_i32 = arith.constant 0 : i32
    %c0_i32_0 = arith.constant 0 : i32
    return %arg1, %c0_i32 : i32, i32
  }
  func.func @transform_2(%arg0: i32, %arg1: i32) -> (i32, i32) {
    %c0_i32 = arith.constant 0 : i32
    %c0_i32_0 = arith.constant 0 : i32
    %c0_i32_1 = arith.constant 0 : i32
    return %c0_i32, %c0_i32_0 : i32, i32
  }
  func.func @transform_3(%arg0: i32, %arg1: i32) -> (i32, i32) {
    %c0_i32 = arith.constant 0 : i32
    %c0_i32_0 = arith.constant 0 : i32
    return %arg0, %c0_i32 : i32, i32
  }
  func.func @transform_4(%arg0: i32, %arg1: i32) -> (i32, i32) {
    %c0_i32 = arith.constant 0 : i32
    %c0_i32_0 = arith.constant 0 : i32
    return %arg0, %c0_i32 : i32, i32
  }
  func.func @transform_5(%arg0: i32, %arg1: i32) -> (i32, i32) {
    %c0_i32 = arith.constant 0 : i32
    %c0_i32_0 = arith.constant 0 : i32
    return %arg0, %c0_i32 : i32, i32
  }
  func.func @transform_6(%arg0: i32, %arg1: i32) -> (i32, i32, i32) {
    %c0_i32 = arith.constant 0 : i32
    %c0_i32_0 = arith.constant 0 : i32
    %c0_i32_1 = arith.constant 0 : i32
    return %arg0, %c0_i32, %c0_i32_0 : i32, i32, i32
  }
  func.func @transform_7(%arg0: i32, %arg1: i32) -> (i32, i32, i32) {
    %c0_i32 = arith.constant 0 : i32
    %c0_i32_0 = arith.constant 0 : i32
    %c0_i32_1 = arith.constant 0 : i32
    return %arg0, %c0_i32, %c0_i32_0 : i32, i32, i32
  }
}

</mosaic_0001>

<bundles_post_ra>
// kernel: tpu_custom_call.1
= control target key start
LH: loop header
LB: loop body
LE: loop exit
PB: predicated region body
PF: predicated region fallthrough
CT: control target
= control target key end

     0   :  { %13 = vsyncpa [#allocation5], 0  ;;  %s1693_s0 = inlined_call_operand.vmem [shape: f32[2,1024], index: 0, kind: input, shape index: {}]   ;;  %s1694_s1 = inlined_call_operand.hbm [shape: bf16[1024,128], index: 1, kind: input, shape index: {}]   ;;  %s1695_s2 = inlined_call_operand.vmem [shape: f32[1,128], index: 2, kind: input, shape index: {}]   ;;  %s1696_s3 = inlined_call_operand.hbm [shape: f32[16,128], index: 3, kind: input, shape index: {}]   ;;  %s1697_s4 = inlined_call_operand.hbm [shape: f32[16,128], index: 4, kind: input, shape index: {}]   ;;  %s1698_s5 = inlined_call_operand.vmem [shape: s32[16,1], index: 5, kind: input, shape index: {}]   ;;  %s1699_s6 = inlined_call_operand.hbm [shape: f32[1,1,128], index: 6, kind: output, shape index: {0}]   ;;  %s1700_s7 = inlined_call_operand.hbm [shape: f32[1,1,128], index: 7, kind: output, shape index: {1}]  }
   0x1   :  { %14 = vsyncpa [#allocation8], 0 }
   0x2   :  { %15 = vsyncpa [#allocation6], 0 }
   0x3   :  { %16 = vsyncpa [#allocation12], 0  ;;  %s1525_s24 = smov [#allocation7]  }
   0x4   :  { %s38_s25 = sshll.u32 %s1525_s24, 4  ;;  %s39_s25 = int_to_ptr.vmem [resolvable:$true] %s38_s25 }
   0x5   :  { %s1425_s26 = scalar_lea.vmem %s39_s25, 256  ;;  %p1430_p1 = scmp.lt.s32.totalorder %s39_s25, %s39_s25 }
   0x6   :  { %p1426_p0 = scmp.ne.s32.totalorder %s39_s25, %s1425_s26  ;;  %p1431_p2 = scmp.lt.s32.totalorder %s1425_s26, %s1425_s26 }
   0x8   :  { %p1432_p3 = por %p1431_p2, %p1430_p1 }
   0xa   :  { %p1433_p4 = pnand %p1432_p3, %p1426_p0 }
   0xc   :  { %1436 = shalt.err (!%p1433_p4)
}
   0xd   :  { %s1526_s27 = smov 128   ;;  %s1527_s28 = smov 8  }
   0xe   :  { %44 = dma.hbm_to_vmem [thread:$0]  %s1696_s3, 256, %s39_s25, [#allocation8], %s1526_s27, %s1526_s27, %s1527_s28  }
   0xf   :  { %s1528_s8 = smov [#allocation4]  }
  0x10   :  { %s24_s9 = sshll.u32 %s1528_s8, 4  ;;  %s25_s9 = int_to_ptr.vmem [resolvable:$true] %s24_s9 }
  0x11   :  { %s1445_s10 = scalar_lea.vmem %s25_s9, 8192  ;;  %p1450_p6 = scmp.lt.s32.totalorder %s25_s9, %s25_s9 }
  0x12   :  { %p1446_p5 = scmp.ne.s32.totalorder %s25_s9, %s1445_s10  ;;  %p1451_p7 = scmp.lt.s32.totalorder %s1445_s10, %s1445_s10 }
  0x14   :  { %p1452_p8 = por %p1451_p7, %p1450_p6 }
  0x16   :  { %p1453_p9 = pnand %p1452_p8, %p1446_p5 }
  0x18   :  { %1456 = shalt.err (!%p1453_p9)
}
  0x19   :  { %s1529_s11 = smov 64   ;;  %s1530_s12 = smov 4  }
  0x1a   :  { %30 = dma.hbm_to_vmem [thread:$0]  %s1694_s1, 8192, %s25_s9, [#allocation5], %s1529_s11, %s1529_s11, %s1530_s12  }
  0x1b   :  { %s1531_s15 = smov [#allocation9]  }
  0x1c   :  { %s50_s16 = sshll.u32 %s1531_s15, 4  ;;  %s51_s16 = int_to_ptr.vmem [resolvable:$true] %s50_s16 }
  0x1d   :  { %s1465_s3 = scalar_lea.vmem %s51_s16, 256  ;;  %p1470_p11 = scmp.lt.s32.totalorder %s51_s16, %s51_s16 }
  0x1e   :  { %p1466_p10 = scmp.ne.s32.totalorder %s51_s16, %s1465_s3  ;;  %p1471_p12 = scmp.lt.s32.totalorder %s1465_s3, %s1465_s3 }
  0x20   :  { %p1472_p13 = por %p1471_p12, %p1470_p11 }
  0x22   :  { %p1473_p0 = pnand %p1472_p13, %p1466_p10 }
  0x24   :  { %1476 = shalt.err (!%p1473_p0)
}
  0x25   :  { %56 = dma.hbm_to_vmem [thread:$0]  %s1697_s4, 256, %s51_s16, [#allocation8], %s1526_s27, %s1526_s27, %s1527_s28  }
  0x26   :  { %1517 = dma.done.wait [#allocation5], 8192  }
  0x27   :  { %1518 = vsyncadd [#allocation5], 4294959104 }
  0x28   :  { %1519 = dma.done.wait [#allocation8], 512  }
  0x29   :  { %1520 = vsyncadd [#allocation8], 4294966784  ;;  %v1315_v0 = vld [vmem:[#allocation4 + $0x78] sm:$0xff]   ;;  %v1319_v4 = vld [vmem:[#allocation4 + $0x70] sm:$0xff]   ;;  %v1532_v25 = vmov 1983009808   ;;  %v108_v27 = vlaneseq }
  0x2a   :  { %v1316_v1 = vld [vmem:[#allocation4 + $0xf8] sm:$0xff]   ;;  %1215 = vmatprep.subr.bf16.mxu0 %v1315_v0  ;;  %v1320_v5 = vld [vmem:[#allocation4 + $0xf0] sm:$0xff]   ;;  %v1323_v8 = vld [vmem:[#allocation4 + $0x68] sm:$0xff]   ;;  %v106_v26 = vunpack.c.l.s4 %v1532_v25 }
  0x2b   :  { %v1317_v2 = vld [vmem:[#allocation4 + $0x38] sm:$0xff]   ;;  %1237 = vmatprep.subr.bf16.mxu1 %v1316_v1  ;;  %v1321_v6 = vld [vmem:[#allocation4 + $0x30] sm:$0xff]   ;;  %v1324_v9 = vld [vmem:[#allocation4 + $0xe8] sm:$0xff]   ;;  %v1586_v33 = vshrl.u32 %v108_v27, 7 }
  0x2c   :  { %v1318_v3 = vld [vmem:[#allocation4 + $0xb8] sm:$0xff]   ;;  %1216 = vmatpush3.bf16.msra.mxu0 %v1317_v2  ;;  %v1322_v7 = vld [vmem:[#allocation4 + $0xb0] sm:$0xff]   ;;  %v1325_v10 = vld [vmem:[#allocation4 + $0x28] sm:$0xff]   ;;  %v107_v32 = vunpack.c.0.s8 %v106_v26 }
  0x2d   :  { %1238 = vmatpush3.bf16.msra.mxu1 %v1318_v3  ;;  %1217 = vmatprep.subr.bf16.mxu0 %v1319_v4  ;;  %v1326_v11 = vld [vmem:[#allocation4 + $0xa8] sm:$0xff]   ;;  %v1327_v12 = vld [vmem:[#allocation4 + $0x60] sm:$0xff]   ;;  %v1331_v16 = vld [vmem:[#allocation4 + $0x58] sm:$0xff]   ;;  %vm961_vm1 = vcmp.lt.s32.totalorder %v1586_v33, 2 }
  0x2e   :  { %1239 = vmatprep.subr.bf16.mxu1 %v1320_v5  ;;  %v1328_v13 = vld [vmem:[#allocation4 + $0xe0] sm:$0xff]   ;;  %v1332_v17 = vld [vmem:[#allocation4 + $0xd8] sm:$0xff]   ;;  %v1335_v20 = vld [vmem:[#allocation4 + $0x50] sm:$0xff]   ;;  %v1589_v37 = vsub.s32 %v107_v32, %v1586_v33 }
  0x2f   :  { %v1329_v14 = vld [vmem:[#allocation4 + $0x20] sm:$0xff]   ;;  %v1333_v18 = vld [vmem:[#allocation4 + $0x18] sm:$0xff]   ;;  %v1336_v21 = vld [vmem:[#allocation4 + $0xd0] sm:$0xff]  }
  0x30   :  { %1218 = vmatpush3.bf16.msra.mxu0 %v1321_v6  ;;  %v1330_v15 = vld [vmem:[#allocation4 + $0xa0] sm:$0xff]   ;;  %v1334_v19 = vld [vmem:[#allocation4 + $0x98] sm:$0xff]   ;;  %v1337_v22 = vld [vmem:[#allocation4 + $0x10] sm:$0xff]  }
  0x31   :  { %1240 = vmatpush3.bf16.msra.mxu1 %v1322_v7  ;;  %1219 = vmatprep.subr.bf16.mxu0 %v1323_v8  ;;  %v1338_v23 = vld [vmem:[#allocation4 + $0x90] sm:$0xff]   ;;  %v1339_v24 = vld [vmem:[#allocation4 + $0x48] sm:$0xff]   ;;  %v1343_v31 = vld [vmem:[#allocation4 + $0x40] sm:$0xff]  }
  0x32   :  { %1241 = vmatprep.subr.bf16.mxu1 %v1324_v9  ;;  %v1340_v28 = vld [vmem:[#allocation4 + $0xc8] sm:$0xff]   ;;  %v1344_v34 = vld [vmem:[#allocation4 + $0xc0] sm:$0xff]   ;;  %v1359_v53 = vld [vmem:[#allocation4 + $0x178] sm:$0xff]  }
  0x33   :  { %v1341_v29 = vld [vmem:[#allocation4 + $0x8] sm:$0xff]   ;;  %v1345_v35 = vld [vmem:[#allocation4] sm:$0xff]   ;;  %v1360_v58 = vld [vmem:[#allocation4 + $0x1f8] sm:$0xff]  }
  0x34   :  { %1220 = vmatpush3.bf16.msra.mxu0 %v1325_v10  ;;  %v1342_v30 = vld [vmem:[#allocation4 + $0x88] sm:$0xff]   ;;  %v1346_v36 = vld [vmem:[#allocation4 + $0x80] sm:$0xff]   ;;  %v1361_v62 = vld [vmem:[#allocation4 + $0x138] sm:$0xff]  }
  0x35   :  { %1242 = vmatpush3.bf16.msra.mxu1 %v1326_v11  ;;  %1221 = vmatprep.subr.bf16.mxu0 %v1327_v12  ;;  %v1347_v38 = vld [vmem:[%s1693_s0] ss:$16 sps:$4 sm:$0xff]   ;;  %v1355_v43 = vld [vmem:[%s1693_s0 + $0x4] ss:$16 sps:$4 sm:$0xff]   ;;  %v1362_v2 = vld [vmem:[#allocation4 + $0x1b8] sm:$0xff]  }
  0x36   :  { %1243 = vmatprep.subr.bf16.mxu1 %v1328_v13  ;;  %v1349_v39 = vld [vmem:[%s1693_s0 + $0x20] ss:$16 sps:$4 sm:$0xff]   ;;  %v111_v42 = vrot.slane %v1347_v38, %v1589_v37  ;;  %v1356_v44 = vld [vmem:[%s1693_s0 + $0x24] ss:$16 sps:$4 sm:$0xff]   ;;  %v118_v50 = vrot.slane %v1355_v43, %v1589_v37  ;;  %v1367_v10 = vld [vmem:[#allocation4 + $0x168] sm:$0xff]  }
  0x37   :  { %v1351_v40 = vld [vmem:[%s1693_s0 + $0x40] ss:$16 sps:$4 sm:$0xff]   ;;  %v1357_v45 = vld [vmem:[%s1693_s0 + $0x44] ss:$16 sps:$4 sm:$0xff]   ;;  %v125_v46 = vrot.slane %v1349_v39, %v1589_v37  ;;  %v132_v51 = vrot.slane %v1356_v44, %v1589_v37  ;;  %v1368_v11 = vld [vmem:[#allocation4 + $0x1e8] sm:$0xff]  }
  0x38   :  { %1222 = vmatpush3.bf16.msra.mxu0 %v1329_v14  ;;  %v1353_v41 = vld [vmem:[%s1693_s0 + $0x60] ss:$16 sps:$4 sm:$0xff]   ;;  %v183_v47 = vrot.slane %v1351_v40, %v1589_v37  ;;  %v1358_v49 = vld [vmem:[%s1693_s0 + $0x64] ss:$16 sps:$4 sm:$0xff]   ;;  %v190_v52 = vrot.slane %v1357_v45, %v1589_v37  ;;  %v1369_v12 = vld [vmem:[#allocation4 + $0x128] sm:$0xff]  }
  0x39   :  { %1244 = vmatpush3.bf16.msra.mxu1 %v1330_v15  ;;  %1223 = vmatprep.subr.bf16.mxu0 %v1331_v16  ;;  %v197_v48 = vrot.slane %v1353_v41, %v1589_v37  ;;  %v134_v54 = vcombine.high %v111_v42, %v125_v46  ;;  %v204_v56 = vrot.slane %v1358_v49, %v1589_v37  ;;  %v1363_v4 = vld [vmem:[#allocation4 + $0x170] sm:$0xff]   ;;  %v1370_v13 = vld [vmem:[#allocation4 + $0x1a8] sm:$0xff]   ;;  %v1371_v14 = vld [vmem:[#allocation4 + $0x160] sm:$0xff]  }
  0x3a   :  { %1245 = vmatprep.subr.bf16.mxu1 %v1332_v17  ;;  %v133_v57 = vcombine.low %v111_v42, %v125_v46  ;;  %v136_v59 = vcombine.high %v118_v50, %v132_v51  ;;  %v135_v61 = vcombine.low %v118_v50, %v132_v51  ;;  %v1364_v7 = vld [vmem:[#allocation4 + $0x1f0] sm:$0xff]   ;;  %v1372_v15 = vld [vmem:[#allocation4 + $0x1e0] sm:$0xff]   ;;  %v1383_v26 = vld [vmem:[#allocation4 + $0x148] sm:$0xff]  }
  0x3b   :  { %v206_v55 = vcombine.high %v183_v47, %v197_v48  ;;  %v205_v60 = vcombine.low %v183_v47, %v197_v48  ;;  %v208_v0 = vcombine.high %v190_v52, %v204_v56  ;;  %v207_v1 = vcombine.low %v190_v52, %v204_v56  ;;  %v1365_v8 = vld [vmem:[#allocation4 + $0x130] sm:$0xff]   ;;  %v1373_v16 = vld [vmem:[#allocation4 + $0x120] sm:$0xff]   ;;  %v1391_v38 = vld [vmem:[%s1693_s0 + $0x8] ss:$16 sps:$4 sm:$0xff]  }
  0x3c   :  { %1224 = vmatpush3.bf16.msra.mxu0 %v1333_v18  ;;  %v1366_v9 = vld [vmem:[#allocation4 + $0x1b0] sm:$0xff]   ;;  %v1374_v17 = vld [vmem:[#allocation4 + $0x1a0] sm:$0xff]   ;;  %v1375_v18 = vld [vmem:[#allocation4 + $0x158] sm:$0xff]   ;;  %v147_v43 = vrot.slane %v1391_v38, %v1589_v37 }
  0x3d   :  { %1246 = vmatpush3.bf16.msra.mxu1 %v1334_v19  ;;  %1225 = vmatprep.subr.bf16.mxu0 %v1335_v20  ;;  %v262_v63 = vpack.c.bf16 %v206_v55, %v134_v54  ;;  %v261_v3 = vpack.c.bf16 %v205_v60, %v133_v57  ;;  %v264_v5 = vpack.c.bf16 %v208_v0, %v136_v59  ;;  %v1376_v19 = vld [vmem:[#allocation4 + $0x1d8] sm:$0xff]   ;;  %v1382_v25 = vld [vmem:[#allocation4 + $0x190] sm:$0xff]   ;;  %v1388_v32 = vld [vmem:[#allocation4 + $0x1c0] sm:$0xff]  }
  0x3e   :  { %1247 = vmatprep.subr.bf16.mxu1 %v1336_v21  ;;  %v263_v6 = vpack.c.bf16 %v207_v1, %v135_v61  ;;  %v1377_v20 = vld [vmem:[#allocation4 + $0x118] sm:$0xff]   ;;  %v1010_v48 = vld [vmem:[#allocation9] sm:$0xff]  ;;  %v1214_v38 = vld [vmem:[%s1695_s2] ss:$0 sm:$0xff]  ;;  %s1534_s2 = smov [#allocation10]  }
  0x3f   :  { %813 = vmatprep.mubr.bf16.mxu0 %v262_v63  ;;  %854 = vmatprep.mubr.bf16.mxu1 %v264_v5  ;;  %v1378_v21 = vld [vmem:[#allocation4 + $0x198] sm:$0xff]   ;;  %v1012_v52 = vmul.f32 0.33333334, %v1010_v48  ;;  %v987_v48 = vld [vmem:[%s1698_s5] sm:$0xff]  ;;  %s1126_s5 = sshll.u32 %s1534_s2, 4  ;;  %s1127_s5 = int_to_ptr.vmem [resolvable:$true] %s1126_s5 }
  0x40   :  { %1226 = vmatpush3.bf16.msra.mxu0 %v1337_v22  ;;  %v1379_v22 = vld [vmem:[#allocation4 + $0x150] sm:$0xff]   ;;  %v1393_v39 = vld [vmem:[%s1693_s0 + $0x28] ss:$16 sps:$4 sm:$0xff]   ;;  %v1399_v41 = vld [vmem:[%s1693_s0 + $0xc] ss:$16 sps:$4 sm:$0xff]   ;;  %s1477_s26 = scalar_lea.vmem %s1127_s5, 16  ;;  %p1482_p2 = scmp.lt.s32.totalorder %s1127_s5, %s1127_s5 }
  0x41   :  { %1248 = vmatpush3.bf16.msra.mxu1 %v1338_v23  ;;  %1227 = vmatprep.subr.bf16.mxu0 %v1339_v24  ;;  %v1380_v23 = vld [vmem:[#allocation4 + $0x1d0] sm:$0xff]   ;;  %v1395_v40 = vld [vmem:[%s1693_s0 + $0x48] ss:$16 sps:$4 sm:$0xff]   ;;  %v1400_v42 = vld [vmem:[%s1693_s0 + $0x2c] ss:$16 sps:$4 sm:$0xff]   ;;  %v161_v44 = vrot.slane %v1393_v39, %v1589_v37  ;;  %v154_v50 = vrot.slane %v1399_v41, %v1589_v37  ;;  %p1478_p1 = scmp.ne.s32.totalorder %s1127_s5, %s1477_s26  ;;  %s1481_s27 = scalar_lea.vmem %s1127_s5, 32 }
  0x42   :  { %1249 = vmatprep.subr.bf16.mxu1 %v1340_v28  ;;  %v1381_v24 = vld [vmem:[#allocation4 + $0x110] sm:$0xff]   ;;  %v1384_v28 = vld [vmem:[#allocation4 + $0x1c8] sm:$0xff]   ;;  %v219_v45 = vrot.slane %v1395_v40, %v1589_v37  ;;  %v168_v51 = vrot.slane %v1400_v42, %v1589_v37  ;;  %p1483_p3 = scmp.lt.s32.totalorder %s1481_s27, %s1477_s26 }
  0x43   :  { %v1401_v46 = vld [vmem:[%s1693_s0 + $0x4c] ss:$16 sps:$4 sm:$0xff]   ;;  %v170_v54 = vcombine.high %v147_v43, %v161_v44  ;;  %v169_v57 = vcombine.low %v147_v43, %v161_v44  ;;  %v1533_v43 = vmov 0  }
  0x44   :  { %1228 = vmatpush3.bf16.msra.mxu0 %v1341_v29  ;;  %v1385_v29 = vld [vmem:[#allocation4 + $0x108] sm:$0xff]   ;;  %v226_v55 = vrot.slane %v1401_v46, %v1589_v37  ;;  %v172_v59 = vcombine.high %v154_v50, %v168_v51  ;;  %v171_v61 = vcombine.low %v154_v50, %v168_v51  ;;  %1314 = vset.pattern.permute.xlu0 %v1533_v43  ;;  %p1484_p4 = por %p1483_p3, %p1482_p2 }
  0x45   :  { %1250 = vmatpush3.bf16.msra.mxu1 %v1342_v30  ;;  %1229 = vmatprep.subr.bf16.mxu0 %v1343_v31  ;;  %v1386_v30 = vld [vmem:[#allocation4 + $0x188] sm:$0xff]   ;;  %v1387_v31 = vld [vmem:[#allocation4 + $0x140] sm:$0xff]  }
  0x46   :  { %1251 = vmatprep.subr.bf16.mxu1 %v1344_v34  ;;  %v1389_v34 = vld [vmem:[#allocation4 + $0x100] sm:$0xff]   ;;  %v1402_v47 = vld [vmem:[%s1693_s0 + $0x6c] ss:$16 sps:$4 sm:$0xff]   ;;  %p1485_p5 = pnand %p1484_p4, %p1478_p1 }
  0x47   :  { %v240_v56 = vrot.slane %v1402_v47, %v1589_v37 }
  0x48   :  { %1230 = vmatpush3.bf16.msra.mxu0 %v1345_v35  ;;  %v1390_v35 = vld [vmem:[#allocation4 + $0x180] sm:$0xff]  }
  0x49   :  { %1252 = vmatpush3.bf16.msra.mxu1 %v1346_v36  ;;  %1259 = vmatprep.subr.bf16.mxu0 %v1359_v53  ;;  %v1624_v36 = vand.u32 127, %v108_v27  ;;  %v1397_v27 = vld [vmem:[%s1693_s0 + $0x68] ss:$16 sps:$4 sm:$0xff]   ;;  %v963_v53 = vld [vmem:[#allocation7] sm:$0xff]  ;;  %v243_v63 = vcombine.low %v226_v55, %v240_v56 }
  0x4a   :  { %1281 = vmatprep.subr.bf16.mxu1 %v1360_v58  ;;  %v233_v49 = vrot.slane %v1397_v27, %v1589_v37 }
  0x4b   :  { %814 = vmatmul.mubr.bf16.vlgmr.msra.gmra.mxu0 %v261_v3  ;;  %vm960_vm0 = vcmp.lt.s32.totalorder %v1624_v36, 16  ;;  %v267_v5 = vpack.c.bf16 %v243_v63, %v171_v61 }
  0x4c   :  { %1260 = vmatpush3.bf16.msra.mxu0 %v1361_v62  ;;  %855 = vmatmul.mubr.bf16.vlgmr.msra.gmra.mxu1 %v263_v6  ;;  %v242_v58 = vcombine.high %v219_v45, %v233_v49  ;;  %v241_v60 = vcombine.low %v219_v45, %v233_v49  ;;  %v244_v62 = vcombine.high %v226_v55, %v240_v56  ;;  %v1014_v0 = vsel %vm960_vm0, %v1012_v52, -1e+30  ;;  %vm1063_vm4 = vmand %vm960_vm0, %vm961_vm1 }
  0x4d   :  { %1261 = vmatprep.subr.bf16.mxu0 %v1363_v4  ;;  %1282 = vmatpush3.bf16.msra.mxu1 %v1362_v2  ;;  %v965_v1 = vsel %vm960_vm0, %v963_v53, -1e+30 }
  0x4e   :  { %1283 = vmatprep.subr.bf16.mxu1 %v1364_v7  ;;  %v266_v2 = vpack.c.bf16 %v242_v58, %v170_v54  ;;  %v265_v3 = vpack.c.bf16 %v241_v60, %v169_v57  ;;  %1016 = vmax.xlane.f32.xlu0 %v1014_v0  ;;  %v268_v4 = vpack.c.bf16 %v244_v62, %v172_v59 }
  0x4f   :  { %967 = vmax.xlane.f32.xlu1 %v965_v1 }
  0x50   :  { %1262 = vmatpush3.bf16.msra.mxu0 %v1365_v8  ;;  %895 = vmatprep.mubr.bf16.mxu0 %v266_v2 }
  0x51   :  { %1263 = vmatprep.subr.bf16.mxu0 %v1367_v10  ;;  %1284 = vmatpush3.bf16.msra.mxu1 %v1366_v9 }
  0x52   :  { %1285 = vmatprep.subr.bf16.mxu1 %v1368_v11  ;;  %936 = vmatprep.mubr.bf16.mxu1 %v268_v4 }
  0x54   :  { %1264 = vmatpush3.bf16.msra.mxu0 %v1369_v12 }
  0x55   :  { %1265 = vmatprep.subr.bf16.mxu0 %v1371_v14  ;;  %1286 = vmatpush3.bf16.msra.mxu1 %v1370_v13 }
  0x56   :  { %1287 = vmatprep.subr.bf16.mxu1 %v1372_v15 }
  0x58   :  { %1266 = vmatpush3.bf16.msra.mxu0 %v1373_v16 }
  0x59   :  { %1267 = vmatprep.subr.bf16.mxu0 %v1375_v18  ;;  %1288 = vmatpush3.bf16.msra.mxu1 %v1374_v17 }
  0x5a   :  { %1289 = vmatprep.subr.bf16.mxu1 %v1376_v19 }
  0x5c   :  { %1268 = vmatpush3.bf16.msra.mxu0 %v1377_v20 }
  0x5d   :  { %1269 = vmatprep.subr.bf16.mxu0 %v1379_v22  ;;  %1290 = vmatpush3.bf16.msra.mxu1 %v1378_v21 }
  0x5e   :  { %1291 = vmatprep.subr.bf16.mxu1 %v1380_v23 }
  0x60   :  { %1270 = vmatpush3.bf16.msra.mxu0 %v1381_v24 }
  0x61   :  { %1271 = vmatprep.subr.bf16.mxu0 %v1383_v26  ;;  %1292 = vmatpush3.bf16.msra.mxu1 %v1382_v25 }
  0x62   :  { %1293 = vmatprep.subr.bf16.mxu1 %v1384_v28 }
  0x64   :  { %1272 = vmatpush3.bf16.msra.mxu0 %v1385_v29 }
  0x65   :  { %1273 = vmatprep.subr.bf16.mxu0 %v1387_v31  ;;  %1294 = vmatpush3.bf16.msra.mxu1 %v1386_v30 }
  0x66   :  { %1295 = vmatprep.subr.bf16.mxu1 %v1388_v32 }
  0x68   :  { %1274 = vmatpush3.bf16.msra.mxu0 %v1389_v34 }
  0x69   :  { %1296 = vmatpush3.bf16.msra.mxu1 %v1390_v35 }
  0x6b   :  { %896 = vmatmul.mubr.bf16.vlgmr.msra.gmra.mxu0 %v265_v3 }
  0x6c   :  { %937 = vmatmul.mubr.bf16.vlgmr.msra.gmra.mxu1 %v267_v5 }
  0xd7   :  { %v1017_v37 = vpop.xlane.xlu0 %1016 }
  0xd8   :  { %v968_v6 = vpop.xlane.xlu1 %967  ;;  %v1663_v7 = vsub.f32 %v1014_v0, %v1017_v37 }
  0xd9   :  { %v1665_v8 = vsub.f32 %v965_v1, %v968_v6 }
  0xda   :  { %v1022_v9 = vmul.f32 1.442695, %v1663_v7 }
  0xdb   :  { %v973_v10 = vmul.f32 1.442695, %v1665_v8 }
  0xdc   :  { %1403 = vpow2.f32 %v1022_v9 }
  0xdd   :  { %1405 = vpow2.f32 %v973_v10 }
  0xe9   :  { %v1404_v11 = vpop.eup %1403 }
  0xea   :  { %1026 = vadd.xlane.f32.xlu1 %v1404_v11  ;;  %v1406_v12 = vpop.eup %1405 }
  0xee   :  { %977 = vadd.xlane.f32.xlu1 %v1406_v12 }
 0x10b   :  { %v1231_v13 = vpop.f32.mrf.mxu0 }
 0x10c   :  { %v1253_v14 = vpop.f32.mrf.mxu1 }
 0x10d   :  { %v1232_v15 = vpop.f32.mrf.mxu0 }
 0x10e   :  { %v1254_v16 = vpop.f32.mrf.mxu1  ;;  %v1233_v21 = vadd.f32 %v1232_v15, %v1231_v13 }
 0x10f   :  { %v1234_v17 = vpop.f32.mrf.mxu0  ;;  %v1255_v22 = vadd.f32 %v1254_v16, %v1253_v14 }
 0x110   :  { %v1256_v18 = vpop.f32.mrf.mxu1 }
 0x111   :  { %v1235_v19 = vpop.f32.mrf.mxu0  ;;  %v857_v26 = vadd.f32 %v1255_v22, %v1233_v21 }
 0x112   :  { %v1257_v20 = vpop.f32.mrf.mxu1 }
 0x12b   :  { %v1275_v23 = vpop.f32.mrf.mxu0 }
 0x12c   :  { %v1297_v24 = vpop.f32.mrf.mxu1 }
 0x12d   :  { %v1276_v25 = vpop.f32.mrf.mxu0 }
 0x12e   :  { %v1277_v28 = vadd.f32 %v1276_v25, %v1275_v23  ;;  %v1298_v29 = vpop.f32.mrf.mxu1 }
 0x12f   :  { %v1278_v30 = vpop.f32.mrf.mxu0  ;;  %v1299_v32 = vadd.f32 %v1298_v29, %v1297_v24 }
 0x130   :  { %v898_v31 = vadd.f32 %v1277_v28, %v857_v26  ;;  %v1300_v34 = vpop.f32.mrf.mxu1 }
 0x131   :  { %v1279_v35 = vpop.f32.mrf.mxu0 }
 0x132   :  { %v939_v39 = vadd.f32 %v1299_v32, %v898_v31  ;;  %v1301_v40 = vpop.f32.mrf.mxu1 }
 0x134   :  { %v1074_v27 = vadd.f32 %v1214_v38, %v939_v39 }
 0x136   :  { %v1076_v41 = vmul.f32 0.33333334, %v1074_v27 }
 0x138   :  { %v1078_v42 = vsel %vm960_vm0, %v1076_v41, -1e+30 }
 0x139   :  { %1080 = vmax.xlane.f32.xlu0 %v1078_v42 }
 0x173   :  { %v1027_v49 = vpop.xlane.xlu1 %1026 }
 0x177   :  { %v978_v50 = vpop.xlane.xlu1 %977 }
 0x1c2   :  { %v1081_v44 = vpop.xlane.xlu0 %1080 }
 0x1c3   :  { %v1084_v45 = vsub.f32 %v1078_v42, %v1081_v44 }
 0x1c5   :  { %v1086_v46 = vmul.f32 1.442695, %v1084_v45 }
 0x1c7   :  { %1407 = vpow2.f32 %v1086_v46 }
 0x1c8   :  { %1409 = vlog2.f32 %v978_v50 }
 0x1c9   :  { %1411 = vlog2.f32 %v1027_v49 }
 0x1d4   :  { %v1408_v47 = vpop.eup %1407 }
 0x1d5   :  { %1090 = vadd.xlane.f32.xlu0 %v1408_v47  ;;  %v1410_v52 = vpop.eup %1409 }
 0x1d6   :  { %v982_v53 = vmul.f32 0.6931472, %v1410_v52  ;;  %v1412_v56 = vpop.eup %1411 }
 0x1d7   :  { %v1031_v59 = vmul.f32 0.6931472, %v1412_v56 }
 0x1d8   :  { %v985_v55 = vsub.f32 %v1665_v8, %v982_v53 }
 0x1d9   :  { %v1034_v1 = vsub.f32 %v1663_v7, %v1031_v59 }
 0x1eb   :  { %990 = vperm.xlu0 %1314, %v987_v48  }
 0x25e   :  { %v1091_v51 = vpop.xlane.xlu0 %1090 }
 0x25f   :  { %1413 = vlog2.f32 %v1091_v51 }
 0x260   :  { %1415 = vrcp.f32 %v1091_v51 }
 0x266   :  { %v991_v54 = vpop.permute.xlu0 %990 }
 0x267   :  { %vm995_vm2 = vcmp.eq.s32.totalorder %v1624_v36, %v991_v54 }
 0x268   :  { %vm997_vm3 = vmand %vm995_vm2, %vm961_vm1 }
 0x269   :  { %v999_v57 = vsel %vm997_vm3, %v985_v55, 0.0 }
 0x26a   :  { %v1002_v58 = vrot.slane %v999_v57, 4 }
 0x26c   :  { %v1003_v60 = vadd.f32 %v1002_v58, %v999_v57  ;;  %v1414_v61 = vpop.eup %1413 }
 0x26d   :  { %v1099_v62 = vmul.f32 0.6931472, %v1414_v61  ;;  %v1416_v0 = vpop.eup %1415 }
 0x26e   :  { %v1004_v63 = vrot.slane %v1003_v60, 2  ;;  %v1096_v4 = vmul.f32 %v1416_v0, %v1408_v47 }
 0x26f   :  { %v1102_v2 = vsub.f32 %v1084_v45, %v1099_v62 }
 0x270   :  { %v1005_v3 = vadd.f32 %v1004_v63, %v1003_v60 }
 0x271   :  { %v1106_v5 = vsub.f32 %v1102_v2, %v1034_v1 }
 0x272   :  { %v1006_v37 = vrot.slane %v1005_v3, 1 }
 0x273   :  { %v1108_v6 = vmul.f32 %v1106_v5, %v1096_v4 }
 0x274   :  { %v1007_v8 = vadd.f32 %v1006_v37, %v1005_v3 }
 0x275   :  { %v1110_v9 = vsel %vm1063_vm4, %v1108_v6, 0.0 }
 0x276   :  { %v1008_v10 = vsub.f32 0.0, %v1007_v8  ;;  %v1113_v11 = vrot.slane %v1110_v9, 4 }
 0x278   :  { %1009 = vst [vmem:[#allocation10] sm:$0x1] %v1008_v10  ;;  %v1114_v7 = vadd.f32 %v1113_v11, %v1110_v9 }
 0x279   :  { %1488 = shalt.err (!%p1485_p5)
}
 0x27a   :  { %1129 = dma.vmem_to_hbm [thread:$0]  %s1127_s5, 16, %s1699_s6, [#allocation6]   ;;  %v1115_v33 = vrot.slane %v1114_v7, 2 }
 0x27b   :  { %s1535_s30 = smov [#allocation11]  }
 0x27c   :  { %v1116_v36 = vadd.f32 %v1115_v33, %v1114_v7  ;;  %s1136_s8 = sshll.u32 %s1535_s30, 4  ;;  %s1137_s8 = int_to_ptr.vmem [resolvable:$true] %s1136_s8 }
 0x27d   :  { %s1497_s9 = scalar_lea.vmem %s1137_s8, 16  ;;  %s1501_s10 = scalar_lea.vmem %s1137_s8, 32 }
 0x27e   :  { %v1117_v12 = vrot.slane %v1116_v36, 1  ;;  %p1498_p6 = scmp.ne.s32.totalorder %s1137_s8, %s1497_s9  ;;  %p1502_p7 = scmp.lt.s32.totalorder %s1137_s8, %s1137_s8 }
 0x27f   :  { %p1503_p8 = scmp.lt.s32.totalorder %s1501_s10, %s1497_s9 }
 0x280   :  { %v1118_v13 = vadd.f32 %v1117_v12, %v1116_v36 }
 0x281   :  { %p1504_p9 = por %p1503_p8, %p1502_p7 }
 0x282   :  { %1119 = vst [vmem:[#allocation11] sm:$0x1] %v1118_v13 }
 0x283   :  { %p1505_p10 = pnand %p1504_p9, %p1498_p6 }
 0x285   :  { %1508 = shalt.err (!%p1505_p10)
}
 0x286   :  { %1139 = dma.vmem_to_hbm [thread:$0]  %s1137_s8, 16, %s1700_s7, [#allocation12]  }
 0x287   :  { %1521 = dma.done.wait [#allocation6], 16  }
 0x288   :  { %1522 = vsyncadd [#allocation6], 4294967280 }
 0x289   :  { %1523 = dma.done.wait [#allocation12], 16  }
 0x28a   :  { %1524 = vsyncadd [#allocation12], 4294967280 }
 0x28b   :  { %1146 = vsyncpa [#allocation5], 1 }
 0x28c   :  { %1147 = vsyncpa [#allocation8], 1 }
 0x28d   :  { %1148 = vsyncpa [#allocation6], 1 }
 0x28e   :  { %1149 = vsyncpa [#allocation12], 1 }

</bundles_post_ra>
